<compile_context>
chip_gen: v6e
topology: v6e:2x2x1
jax: 0.10.0
libtpu: 0.0.40
codegen_flags: <defaults>
</compile_context>

<pallas_src>
import jax
import jax.numpy as jnp
from jax.experimental import pallas as pl
from jax.experimental.pallas import tpu as pltpu


def _round_up(n, m):
    return ((n + m - 1) // m) * m


def _vmem_capacity_bytes():
    try:
        return int(pltpu.get_tpu_info().vmem_capacity_bytes)
    except Exception:
        pass
    try:
        kind = jax.devices()[0].device_kind.lower()
        if "v5" in kind or "v6" in kind:
            return 128 << 20          # v5e / v6e: 128 MiB per TensorCore
    except Exception:
        pass
    return 64 << 20                   # conservative (v7x per-TC)


def _mxu_is_256():
    try:
        kind = jax.devices()[0].device_kind.lower()
        return ("v6" in kind) or ("v7" in kind)
    except Exception:
        return False


# ----------------------------------------------------------------------------
# Kernels
# ----------------------------------------------------------------------------
def _decoder_kernel_resident(x_ref, w1_ref, b1_ref, w2_ref, b2_ref, o_ref):
    # Single-pass, weight-stationary: W1/W2/biases stay VMEM-resident across the
    # batch grid.  x is cast to bf16 on the VPU (hides under the MXU); f32
    # accumulation; bias + ReLU in f32; single cast on store.
    x = x_ref[...].astype(w1_ref.dtype)
    h = jnp.dot(x, w1_ref[...], preferred_element_type=jnp.float32)
    h = jnp.maximum(h + b1_ref[...], 0.0)
    y = jnp.dot(h.astype(w2_ref.dtype), w2_ref[...],
                preferred_element_type=jnp.float32)
    o_ref[...] = (y + b2_ref[...]).astype(o_ref.dtype)


def _decoder_kernel_chunked(x_ref, w1_ref, b1_ref, w2_ref, b2_ref, o_ref, acc_ref):
    # Hidden-dim-chunked: grid=(batch tiles, hidden chunks).  W1[:, chunk] and
    # W2[chunk, :] stream through VMEM; f32 accumulator in scratch (P3).
    k = pl.program_id(1)

    @pl.when(k == 0)
    def _():
        acc_ref[...] = jnp.zeros_like(acc_ref)

    x = x_ref[...].astype(w1_ref.dtype)
    h = jnp.dot(x, w1_ref[...], preferred_element_type=jnp.float32)
    h = jnp.maximum(h + b1_ref[...], 0.0)
    acc_ref[...] += jnp.dot(h.astype(w2_ref.dtype), w2_ref[...],
                            preferred_element_type=jnp.float32)

    @pl.when(k == pl.num_programs(1) - 1)
    def _():
        o_ref[...] = (acc_ref[...] + b2_ref[...]).astype(o_ref.dtype)


# ----------------------------------------------------------------------------
# Parameter preparation (hoisted out of the forward path)
# ----------------------------------------------------------------------------
def prepare_decoder_params(w1, b1, w2, b2):
    """Pad + cast the Linear params ONCE.  Weights stored (in_dim, out_dim),
    zero-padded to lane/MXU-friendly sizes (exact: padded hidden cols have
    bias 0 -> relu(0)=0; padded output cols sliced off in the wrapper)."""
    H = w1.shape[0]
    Y = w2.shape[1]
    fm = 256 if _mxu_is_256() else 128
    Hp = _round_up(H, fm if H >= 256 else 128)
    Yp = _round_up(Y, fm if Y >= 256 else 128)
    bf16, f32 = jnp.bfloat16, jnp.float32
    w1p = jnp.zeros((Hp, Hp), bf16).at[:H, :H].set(w1.astype(bf16))
    w2p = jnp.zeros((Hp, Yp), bf16).at[:H, :Y].set(w2.astype(bf16))
    b1p = jnp.zeros((1, Hp), f32).at[:, :H].set(jnp.reshape(b1, (1, H)).astype(f32))
    b2p = jnp.zeros((1, Yp), f32).at[:, :Y].set(jnp.reshape(b2, (1, Y)).astype(f32))
    # TODO(synk): optional fp8 (v7x) / int8 (v6e) weight storage for very large H.
    return dict(w1p=w1p, b1p=b1p, w2p=w2p, b2p=b2p, H=H, Y=Y, Hp=Hp, Yp=Yp)


# ----------------------------------------------------------------------------
# pallas_call builders
# ----------------------------------------------------------------------------
def _run_resident(xp, w1p, b1p, w2p, b2p, *, TM, Bp, Hp, Yp, vmem_limit,
                  single_buffer_weights):
    wkw = {"pipeline_mode": pl.Buffered(1)} if single_buffer_weights else {}
    return pl.pallas_call(
        _decoder_kernel_resident,
        out_shape=jax.ShapeDtypeStruct((Bp, Yp), jnp.float32),
        grid_spec=pltpu.PrefetchScalarGridSpec(
            num_scalar_prefetch=0,
            grid=(Bp // TM,),
            in_specs=[
                pl.BlockSpec((TM, Hp), lambda i: (i, 0)),          # x: batch-tiled
                pl.BlockSpec((Hp, Hp), lambda i: (0, 0), **wkw),   # W1 resident
                pl.BlockSpec((1, Hp), lambda i: (0, 0), **wkw),    # b1
                pl.BlockSpec((Hp, Yp), lambda i: (0, 0), **wkw),   # W2 resident
                pl.BlockSpec((1, Yp), lambda i: (0, 0), **wkw),    # b2
            ],
            out_specs=pl.BlockSpec((TM, Yp), lambda i: (i, 0)),
        ),
        compiler_params=pltpu.CompilerParams(
            dimension_semantics=("parallel",),      # megacore split on v7x
            vmem_limit_bytes=vmem_limit,
        ),
    )(xp, w1p, b1p, w2p, b2p)


def _run_chunked(xp, w1p, b1p, w2p, b2p, *, TM, Bp, Hp, Yp, TH, vmem_limit):
    return pl.pallas_call(
        _decoder_kernel_chunked,
        out_shape=jax.ShapeDtypeStruct((Bp, Yp), jnp.float32),
        grid_spec=pltpu.PrefetchScalarGridSpec(
            num_scalar_prefetch=0,
            grid=(Bp // TM, Hp // TH),
            in_specs=[
                pl.BlockSpec((TM, Hp), lambda i, k: (i, 0)),   # x resident over k
                pl.BlockSpec((Hp, TH), lambda i, k: (0, k)),   # W1[:, chunk]
                pl.BlockSpec((1, TH), lambda i, k: (0, k)),    # b1[chunk]
                pl.BlockSpec((TH, Yp), lambda i, k: (k, 0)),   # W2[chunk, :]
                pl.BlockSpec((1, Yp), lambda i, k: (0, 0)),    # b2
            ],
            out_specs=pl.BlockSpec((TM, Yp), lambda i, k: (i, 0)),
            scratch_shapes=[pltpu.VMEM((TM, Yp), jnp.float32)],
        ),
        compiler_params=pltpu.CompilerParams(
            dimension_semantics=("parallel", "arbitrary"),
            vmem_limit_bytes=vmem_limit,
        ),
    )(xp, w1p, b1p, w2p, b2p)


# ----------------------------------------------------------------------------
# Forward
# ----------------------------------------------------------------------------
def decoder_forward(x, params, *, block_m=None):
    """x: (B, h_dim).  Returns the flattened (B * y_dim,) output (y.view(-1))."""
    H, Y, Hp, Yp = params["H"], params["Y"], params["Hp"], params["Yp"]
    w1p, b1p, w2p, b2p = params["w1p"], params["b1p"], params["w2p"], params["b2p"]
    B = x.shape[0]
    assert x.shape[1] == H

    vmem_cap = _vmem_capacity_bytes()
    budget = int(0.80 * vmem_cap)
    vmem_limit = max(budget, 32 << 20)
    if block_m is None:
        # 512-row tiles on 128 MiB parts (v5e/v6e); 256 on v7x (64 MiB, 2 TCs).
        block_m = 512 if vmem_cap >= (96 << 20) else 256

    x_isz = jnp.dtype(x.dtype).itemsize
    weight_bytes = Hp * Hp * 2 + Hp * Yp * 2 + (Hp + Yp) * 4   # single-buffered

    def fits_resident(tm):
        need = (2 * tm * Hp * x_isz      # x tiles (double-buffered, native dtype)
                + weight_bytes           # resident weights/biases
                + 2 * tm * Yp * 4        # out tiles (f32, double-buffered)
                + tm * Hp * 6            # in-body h (f32) + bf16 recast
                + tm * Yp * 4)           # in-body y (f32)
        return need <= budget

    cands = [tm for tm in (512, 256, 128, 64, 32, 16, 8) if tm <= block_m]
    resident_cands = [tm for tm in cands if fits_resident(tm)]

    if resident_cands:
        # Minimize batch-pad waste; prefer >=2 grid tiles (v7x megacore);
        # prefer the larger tile among ties.
        TM = min(resident_cands,
                 key=lambda tm: (_round_up(B, tm),
                                 0 if _round_up(B, tm) // tm >= 2 else 1,
                                 -tm))
        Bp = _round_up(B, TM)
        xp = x if (Bp == B and Hp == H) else \
            jnp.zeros((Bp, Hp), x.dtype).at[:B, :H].set(x)
        kwargs = dict(TM=TM, Bp=Bp, Hp=Hp, Yp=Yp, vmem_limit=vmem_limit)
        try:
            out = _run_resident(xp, w1p, b1p, w2p, b2p,
                                single_buffer_weights=True, **kwargs)
            out = jax.block_until_ready(out)
        except Exception:
            # Fallback if this jax build rejects pipeline_mode=pl.Buffered(1).
            out = _run_resident(xp, w1p, b1p, w2p, b2p,
                                single_buffer_weights=False, **kwargs)
    else:
        # Weights too large to keep fully resident (e.g. large H on v7x's
        # 64 MiB/TC): stream W1/W2 hidden-dim chunks with an f32 accumulator.
        TM = min(block_m, 256)

        def fits_chunked(tm, th):
            need = (2 * tm * Hp * x_isz
                    + 2 * (Hp * th * 2 + th * Yp * 2 + th * 4) + Yp * 8
                    + 2 * tm * Yp * 4
                    + tm * Yp * 4          # accumulator scratch
                    + tm * th * 6)         # in-body h (f32) + bf16 recast
            return need <= budget

        TH = None
        while TH is None:
            for th in (2048, 1024, 512, 256, 128):
                if Hp % th == 0 and fits_chunked(TM, th):
                    TH = th
                    break
            if TH is None:
                if TM <= 8:
                    TM, TH = 8, 128        # last resort
                    break
                TM //= 2
        Bp = _round_up(B, TM)
        xp = x if (Bp == B and Hp == H) else \
            jnp.zeros((Bp, Hp), x.dtype).at[:B, :H].set(x)
        out = _run_chunked(xp, w1p, b1p, w2p, b2p,
                           TM=TM, Bp=Bp, Hp=Hp, Yp=Yp, TH=TH,
                           vmem_limit=vmem_limit)

    return out[:B, :Y].reshape(-1)


def init_decoder_params(key, h_dim, y_dim, dtype=jnp.float32):
    """nn.Linear-style uniform(-1/sqrt(fan_in), +1/sqrt(fan_in)) init.
    Weights stored (in_dim, out_dim); biases 1-D."""
    k1, k2, k3, k4 = jax.random.split(key, 4)
    bound = 1.0 / (h_dim ** 0.5)
    w1 = jax.random.uniform(k1, (h_dim, h_dim), dtype, -bound, bound)
    b1 = jax.random.uniform(k2, (h_dim,), dtype, -bound, bound)
    w2 = jax.random.uniform(k3, (h_dim, y_dim), dtype, -bound, bound)
    b2 = jax.random.uniform(k4, (y_dim,), dtype, -bound, bound)
    return w1, b1, w2, b2


if __name__ == "__main__":
    h_dim, y_dim, batch = 32, 16, 8

    key = jax.random.PRNGKey(0)
    kx, kp = jax.random.split(key)
    x = jax.random.normal(kx, (batch, h_dim), jnp.float32)
    w1, b1, w2, b2 = init_decoder_params(kp, h_dim, y_dim)

    params = prepare_decoder_params(w1, b1, w2, b2)   # once, outside the hot path
    out = decoder_forward(x, params)
    out = jax.block_until_ready(out)
    assert out.shape == (batch * y_dim,)

    # Reference matching the kernel's bf16-MXU / f32-accumulate path.
    f32, bf16 = jnp.float32, jnp.bfloat16
    xb = x.astype(bf16).astype(f32)
    w1b = w1.astype(bf16).astype(f32)
    w2b = w2.astype(bf16).astype(f32)
    h = jnp.maximum(xb @ w1b + b1[None, :], 0.0)
    ref = (h.astype(bf16).astype(f32) @ w2b + b2[None, :]).reshape(-1)
    assert jnp.allclose(out, ref, atol=1e-2, rtol=1e-2)

    # Loose check against the pure-f32 PyTorch-equivalent forward.
    ref_f32 = (jnp.maximum(x @ w1 + b1[None, :], 0.0) @ w2 + b2[None, :]).reshape(-1)
    assert jnp.allclose(out, ref_f32, atol=5e-2, rtol=5e-2)

    print("KERNEL_OK")
</pallas_src>

<mosaic_0001>
module attributes {stable_mosaic.version = 11 : i64} {
  func.func @_decoder_kernel_resident(%arg0: i32, %arg1: memref<8x128xf32, #tpu.memory_space<vmem>>, %arg2: memref<128x128xbf16, #tpu.memory_space<vmem>>, %arg3: memref<1x128xf32, #tpu.memory_space<vmem>>, %arg4: memref<128x128xbf16, #tpu.memory_space<vmem>>, %arg5: memref<1x128xf32, #tpu.memory_space<vmem>>, %arg6: memref<8x128xf32, #tpu.memory_space<vmem>>) attributes {dimension_semantics = [#tpu.dimension_semantics<parallel>], iteration_bounds = array<i64: 1>, scalar_prefetch = 0 : i64, scratch_operands = 0 : i64, tpu.core_type = #tpu.core_type<tc>, window_params = [{transform_indices = @transform_0, window_bounds = array<i64: 8, 128>}, {pipeline_mode = #tpu.pipeline_mode<synchronous>, transform_indices = @transform_1, window_bounds = array<i64: 128, 128>}, {pipeline_mode = #tpu.pipeline_mode<synchronous>, transform_indices = @transform_2, window_bounds = array<i64: 1, 128>}, {pipeline_mode = #tpu.pipeline_mode<synchronous>, transform_indices = @transform_3, window_bounds = array<i64: 128, 128>}, {pipeline_mode = #tpu.pipeline_mode<synchronous>, transform_indices = @transform_4, window_bounds = array<i64: 1, 128>}, {transform_indices = @transform_5, window_bounds = array<i64: 8, 128>}]} {
    %c0 = arith.constant 0 : index
    %c0_0 = arith.constant 0 : index
    %0 = vector.load %arg1[%c0, %c0_0] : memref<8x128xf32, #tpu.memory_space<vmem>>, vector<8x128xf32>
    %1 = arith.truncf %0 : vector<8x128xf32> to vector<8x128xbf16>
    %c0_1 = arith.constant 0 : index
    %c0_2 = arith.constant 0 : index
    %2 = vector.load %arg2[%c0_1, %c0_2] : memref<128x128xbf16, #tpu.memory_space<vmem>>, vector<128x128xbf16>
    %cst = arith.constant dense<0.000000e+00> : vector<8x128xf32>
    %3 = tpu.matmul %1, %2, %cst {dimension_numbers = #tpu.dot_dimension_numbers<[1], [0], [0], [1], [0, 0, 1, 1], [], []>} : vector<8x128xbf16>, vector<128x128xbf16>, vector<8x128xf32> -> vector<8x128xf32>
    %c0_3 = arith.constant 0 : index
    %c0_4 = arith.constant 0 : index
    %4 = vector.load %arg3[%c0_3, %c0_4] : memref<1x128xf32, #tpu.memory_space<vmem>>, vector<1x128xf32>
    %5 = vector.broadcast %4 : vector<1x128xf32> to vector<8x128xf32>
    %6 = arith.addf %3, %5 : vector<8x128xf32>
    %cst_5 = arith.constant 0.000000e+00 : f32
    %7 = vector.broadcast %cst_5 : f32 to vector<8x128xf32>
    %8 = arith.maximumf %6, %7 : vector<8x128xf32>
    %9 = arith.truncf %8 : vector<8x128xf32> to vector<8x128xbf16>
    %c0_6 = arith.constant 0 : index
    %c0_7 = arith.constant 0 : index
    %10 = vector.load %arg4[%c0_6, %c0_7] : memref<128x128xbf16, #tpu.memory_space<vmem>>, vector<128x128xbf16>
    %cst_8 = arith.constant dense<0.000000e+00> : vector<8x128xf32>
    %11 = tpu.matmul %9, %10, %cst_8 {dimension_numbers = #tpu.dot_dimension_numbers<[1], [0], [0], [1], [0, 0, 1, 1], [], []>} : vector<8x128xbf16>, vector<128x128xbf16>, vector<8x128xf32> -> vector<8x128xf32>
    %c0_9 = arith.constant 0 : index
    %c0_10 = arith.constant 0 : index
    %12 = vector.load %arg5[%c0_9, %c0_10] : memref<1x128xf32, #tpu.memory_space<vmem>>, vector<1x128xf32>
    %13 = vector.broadcast %12 : vector<1x128xf32> to vector<8x128xf32>
    %14 = arith.addf %11, %13 : vector<8x128xf32>
    %c0_11 = arith.constant 0 : index
    %c0_12 = arith.constant 0 : index
    %15 = vector.load %arg6[%c0_11, %c0_12] : memref<8x128xf32, #tpu.memory_space<vmem>>, vector<8x128xf32>
    tpu.vector_store %arg6[%c0_11, %c0_12], %14 {strides = array<i32>} : memref<8x128xf32, #tpu.memory_space<vmem>>, vector<8x128xf32>,
    return
  }
  func.func @transform_0(%arg0: i32) -> (i32, i32) {
    %c0_i32 = arith.constant 0 : i32
    %c0_i32_0 = arith.constant 0 : i32
    return %arg0, %c0_i32 : i32, i32
  }
  func.func @transform_1(%arg0: i32) -> (i32, i32) {
    %c0_i32 = arith.constant 0 : i32
    %c0_i32_0 = arith.constant 0 : i32
    %c0_i32_1 = arith.constant 0 : i32
    return %c0_i32, %c0_i32_0 : i32, i32
  }
  func.func @transform_2(%arg0: i32) -> (i32, i32) {
    %c0_i32 = arith.constant 0 : i32
    %c0_i32_0 = arith.constant 0 : i32
    %c0_i32_1 = arith.constant 0 : i32
    return %c0_i32, %c0_i32_0 : i32, i32
  }
  func.func @transform_3(%arg0: i32) -> (i32, i32) {
    %c0_i32 = arith.constant 0 : i32
    %c0_i32_0 = arith.constant 0 : i32
    %c0_i32_1 = arith.constant 0 : i32
    return %c0_i32, %c0_i32_0 : i32, i32
  }
  func.func @transform_4(%arg0: i32) -> (i32, i32) {
    %c0_i32 = arith.constant 0 : i32
    %c0_i32_0 = arith.constant 0 : i32
    %c0_i32_1 = arith.constant 0 : i32
    return %c0_i32, %c0_i32_0 : i32, i32
  }
  func.func @transform_5(%arg0: i32) -> (i32, i32) {
    %c0_i32 = arith.constant 0 : i32
    %c0_i32_0 = arith.constant 0 : i32
    return %arg0, %c0_i32 : i32, i32
  }
}

module attributes {stable_mosaic.version = 11 : i64} {
  func.func @_decoder_kernel_resident(%arg0: i32, %arg1: memref<8x128xf32, #tpu.memory_space<vmem>>, %arg2: memref<128x128xbf16, #tpu.memory_space<vmem>>, %arg3: memref<1x128xf32, #tpu.memory_space<vmem>>, %arg4: memref<128x128xbf16, #tpu.memory_space<vmem>>, %arg5: memref<1x128xf32, #tpu.memory_space<vmem>>, %arg6: memref<8x128xf32, #tpu.memory_space<vmem>>) attributes {dimension_semantics = [#tpu.dimension_semantics<parallel>], iteration_bounds = array<i64: 1>, scalar_prefetch = 0 : i64, scratch_operands = 0 : i64, tpu.core_type = #tpu.core_type<tc>, window_params = [{transform_indices = @transform_0, window_bounds = array<i64: 8, 128>}, {pipeline_mode = #tpu.pipeline_mode<synchronous>, transform_indices = @transform_1, window_bounds = array<i64: 128, 128>}, {pipeline_mode = #tpu.pipeline_mode<synchronous>, transform_indices = @transform_2, window_bounds = array<i64: 1, 128>}, {pipeline_mode = #tpu.pipeline_mode<synchronous>, transform_indices = @transform_3, window_bounds = array<i64: 128, 128>}, {pipeline_mode = #tpu.pipeline_mode<synchronous>, transform_indices = @transform_4, window_bounds = array<i64: 1, 128>}, {transform_indices = @transform_5, window_bounds = array<i64: 8, 128>}]} {
    %c0 = arith.constant 0 : index
    %c0_0 = arith.constant 0 : index
    %0 = vector.load %arg1[%c0, %c0_0] : memref<8x128xf32, #tpu.memory_space<vmem>>, vector<8x128xf32>
    %1 = arith.truncf %0 : vector<8x128xf32> to vector<8x128xbf16>
    %c0_1 = arith.constant 0 : index
    %c0_2 = arith.constant 0 : index
    %2 = vector.load %arg2[%c0_1, %c0_2] : memref<128x128xbf16, #tpu.memory_space<vmem>>, vector<128x128xbf16>
    %cst = arith.constant dense<0.000000e+00> : vector<8x128xf32>
    %3 = tpu.matmul %1, %2, %cst {dimension_numbers = #tpu.dot_dimension_numbers<[1], [0], [0], [1], [0, 0, 1, 1], [], []>} : vector<8x128xbf16>, vector<128x128xbf16>, vector<8x128xf32> -> vector<8x128xf32>
    %c0_3 = arith.constant 0 : index
    %c0_4 = arith.constant 0 : index
    %4 = vector.load %arg3[%c0_3, %c0_4] : memref<1x128xf32, #tpu.memory_space<vmem>>, vector<1x128xf32>
    %5 = vector.broadcast %4 : vector<1x128xf32> to vector<8x128xf32>
    %6 = arith.addf %3, %5 : vector<8x128xf32>
    %cst_5 = arith.constant 0.000000e+00 : f32
    %7 = vector.broadcast %cst_5 : f32 to vector<8x128xf32>
    %8 = arith.maximumf %6, %7 : vector<8x128xf32>
    %9 = arith.truncf %8 : vector<8x128xf32> to vector<8x128xbf16>
    %c0_6 = arith.constant 0 : index
    %c0_7 = arith.constant 0 : index
    %10 = vector.load %arg4[%c0_6, %c0_7] : memref<128x128xbf16, #tpu.memory_space<vmem>>, vector<128x128xbf16>
    %cst_8 = arith.constant dense<0.000000e+00> : vector<8x128xf32>
    %11 = tpu.matmul %9, %10, %cst_8 {dimension_numbers = #tpu.dot_dimension_numbers<[1], [0], [0], [1], [0, 0, 1, 1], [], []>} : vector<8x128xbf16>, vector<128x128xbf16>, vector<8x128xf32> -> vector<8x128xf32>
    %c0_9 = arith.constant 0 : index
    %c0_10 = arith.constant 0 : index
    %12 = vector.load %arg5[%c0_9, %c0_10] : memref<1x128xf32, #tpu.memory_space<vmem>>, vector<1x128xf32>
    %13 = vector.broadcast %12 : vector<1x128xf32> to vector<8x128xf32>
    %14 = arith.addf %11, %13 : vector<8x128xf32>
    %c0_11 = arith.constant 0 : index
    %c0_12 = arith.constant 0 : index
    %15 = vector.load %arg6[%c0_11, %c0_12] : memref<8x128xf32, #tpu.memory_space<vmem>>, vector<8x128xf32>
    tpu.vector_store %arg6[%c0_11, %c0_12], %14 {strides = array<i32>} : memref<8x128xf32, #tpu.memory_space<vmem>>, vector<8x128xf32>,
    return
  }
  func.func @transform_0(%arg0: i32) -> (i32, i32) {
    %c0_i32 = arith.constant 0 : i32
    %c0_i32_0 = arith.constant 0 : i32
    return %arg0, %c0_i32 : i32, i32
  }
  func.func @transform_1(%arg0: i32) -> (i32, i32) {
    %c0_i32 = arith.constant 0 : i32
    %c0_i32_0 = arith.constant 0 : i32
    %c0_i32_1 = arith.constant 0 : i32
    return %c0_i32, %c0_i32_0 : i32, i32
  }
  func.func @transform_2(%arg0: i32) -> (i32, i32) {
    %c0_i32 = arith.constant 0 : i32
    %c0_i32_0 = arith.constant 0 : i32
    %c0_i32_1 = arith.constant 0 : i32
    return %c0_i32, %c0_i32_0 : i32, i32
  }
  func.func @transform_3(%arg0: i32) -> (i32, i32) {
    %c0_i32 = arith.constant 0 : i32
    %c0_i32_0 = arith.constant 0 : i32
    %c0_i32_1 = arith.constant 0 : i32
    return %c0_i32, %c0_i32_0 : i32, i32
  }
  func.func @transform_4(%arg0: i32) -> (i32, i32) {
    %c0_i32 = arith.constant 0 : i32
    %c0_i32_0 = arith.constant 0 : i32
    %c0_i32_1 = arith.constant 0 : i32
    return %c0_i32, %c0_i32_0 : i32, i32
  }
  func.func @transform_5(%arg0: i32) -> (i32, i32) {
    %c0_i32 = arith.constant 0 : i32
    %c0_i32_0 = arith.constant 0 : i32
    return %arg0, %c0_i32 : i32, i32
  }
}

</mosaic_0001>

<bundles_post_ra>
// kernel: tpu_custom_call.1
= control target key start
LH: loop header
LB: loop body
LE: loop exit
PB: predicated region body
PF: predicated region fallthrough
CT: control target
= control target key end

     0   :  { %10 = vsyncpa [#allocation3], 0  ;;  %s546_s0 = inlined_call_operand.hbm [shape: f32[8,128], index: 0, kind: input, shape index: {}]   ;;  %s547_s1 = inlined_call_operand.hbm [shape: bf16[128,128], index: 1, kind: input, shape index: {}]   ;;  %s548_s2 = inlined_call_operand.vmem [shape: f32[1,128], index: 2, kind: input, shape index: {}]   ;;  %s549_s3 = inlined_call_operand.hbm [shape: bf16[128,128], index: 3, kind: input, shape index: {}]   ;;  %s550_s4 = inlined_call_operand.vmem [shape: f32[1,128], index: 4, kind: input, shape index: {}]   ;;  %s551_s5 = inlined_call_operand.hbm [shape: f32[8,128], index: 5, kind: output, shape index: {}]  }
   0x1   :  { %11 = vsyncpa [#allocation6], 0 }
   0x2   :  { %12 = vsyncpa [#allocation4], 0  ;;  %s490_s18 = smov [#allocation5]  }
   0x3   :  { %s28_s19 = sshll.u32 %s490_s18, 4  ;;  %s29_s19 = int_to_ptr.vmem [resolvable:$true] %s28_s19 }
   0x4   :  { %s412_s20 = scalar_lea.vmem %s29_s19, 1024  ;;  %p417_p1 = scmp.lt.s32.totalorder %s29_s19, %s29_s19 }
   0x5   :  { %p413_p0 = scmp.ne.s32.totalorder %s29_s19, %s412_s20  ;;  %p418_p2 = scmp.lt.s32.totalorder %s412_s20, %s412_s20 }
   0x7   :  { %p419_p3 = por %p418_p2, %p417_p1 }
   0x9   :  { %p420_p4 = pnand %p419_p3, %p413_p0 }
   0xb   :  { %423 = shalt.err (!%p420_p4)
}
   0xc   :  { %s491_s21 = smov 64   ;;  %s492_s22 = smov 4  }
   0xd   :  { %34 = dma.hbm_to_vmem [thread:$0]  %s547_s1, 1024, %s29_s19, [#allocation6], %s491_s21, %s491_s21, %s492_s22  }
   0xe   :  { %s493_s25 = smov [#allocation2]   ;;  %s494_s27 = smov [#allocation7]  }
   0xf   :  { %s19_s26 = sshll.u32 %s493_s25, 4  ;;  %s42_s28 = sshll.u32 %s494_s27, 4  ;;  %s20_s26 = int_to_ptr.vmem [resolvable:$true] %s19_s26  ;;  %s43_s28 = int_to_ptr.vmem [resolvable:$true] %s42_s28 }
  0x10   :  { %s432_s29 = scalar_lea.vmem %s20_s26, 128  ;;  %p437_p6 = scmp.lt.s32.totalorder %s20_s26, %s20_s26 }
  0x11   :  { %p433_p5 = scmp.ne.s32.totalorder %s20_s26, %s432_s29  ;;  %p438_p7 = scmp.lt.s32.totalorder %s432_s29, %s432_s29 }
  0x13   :  { %p439_p8 = por %p438_p7, %p437_p6 }
  0x15   :  { %p440_p9 = pnand %p439_p8, %p433_p5 }
  0x17   :  { %443 = shalt.err (!%p440_p9)
}
  0x18   :  { %22 = dma.hbm_to_vmem [thread:$0]  %s546_s0, 128, %s20_s26, [#allocation3]  }
  0x19   :  { %s452_s7 = scalar_lea.vmem %s43_s28, 1024  ;;  %p457_p11 = scmp.lt.s32.totalorder %s43_s28, %s43_s28 }
  0x1a   :  { %p453_p10 = scmp.ne.s32.totalorder %s43_s28, %s452_s7  ;;  %p458_p12 = scmp.lt.s32.totalorder %s452_s7, %s452_s7 }
  0x1c   :  { %p459_p13 = por %p458_p12, %p457_p11 }
  0x1e   :  { %p460_p0 = pnand %p459_p13, %p453_p10 }
  0x20   :  { %463 = shalt.err (!%p460_p0)
}
  0x21   :  { %48 = dma.hbm_to_vmem [thread:$0]  %s549_s3, 1024, %s43_s28, [#allocation6], %s491_s21, %s491_s21, %s492_s22  }
  0x22   :  { %484 = dma.done.wait [#allocation3], 128  }
  0x23   :  { %485 = vsyncadd [#allocation3], 4294967168 }
  0x24   :  { %486 = dma.done.wait [#allocation6], 2048  }
  0x25   :  { %487 = vsyncadd [#allocation6], 4294965248  ;;  %v495_v0 = vmov 0.0   ;;  %vm496_vm0 = vmmov 0   ;;  %v388_v1 = vld [vmem:[#allocation5 + $0x38] sm:$0xff]   ;;  %v389_v2 = vld [vmem:[#allocation5 + $0x30] sm:$0xff]  }
  0x26   :  { %340 = vmatprep.subr.bf16.mxu0 %v495_v0  ;;  %356 = vmatprep.mubr.msk.bf16.mxu0 %vm496_vm0, %v495_v0  ;;  %v390_v3 = vld [vmem:[#allocation5 + $0x28] sm:$0xff]   ;;  %v396_v4 = vld [vmem:[#allocation7 + $0x38] sm:$0xff]   ;;  %v391_v5 = vld [vmem:[#allocation5 + $0x20] sm:$0xff]   ;;  %s497_s11 = smov [#allocation8]  }
  0x27   :  { %360 = vmatprep.subr.bf16.mxu1 %v495_v0  ;;  %376 = vmatprep.mubr.msk.bf16.mxu1 %vm496_vm0, %v495_v0  ;;  %v397_v6 = vld [vmem:[#allocation7 + $0x30] sm:$0xff]   ;;  %v392_v7 = vld [vmem:[#allocation5 + $0x18] sm:$0xff]   ;;  %v398_v8 = vld [vmem:[#allocation7 + $0x28] sm:$0xff]   ;;  %s294_s12 = sshll.u32 %s497_s11, 4  ;;  %s295_s12 = int_to_ptr.vmem [resolvable:$true] %s294_s12 }
  0x28   :  { %341 = vmatpush3.bf16.msra.mxu0 %v388_v1  ;;  %361 = vmatpush3.bf16.msra.mxu1 %v396_v4  ;;  %v393_v9 = vld [vmem:[#allocation5 + $0x10] sm:$0xff]   ;;  %v399_v10 = vld [vmem:[#allocation7 + $0x20] sm:$0xff]   ;;  %v394_v11 = vld [vmem:[#allocation5 + $0x8] sm:$0xff]   ;;  %p469_p2 = scmp.lt.s32.totalorder %s295_s12, %s295_s12 }
  0x29   :  { %342 = vmatprep.subr.bf16.mxu0 %v495_v0  ;;  %362 = vmatprep.subr.bf16.mxu1 %v495_v0  ;;  %v400_v12 = vld [vmem:[#allocation7 + $0x18] sm:$0xff]   ;;  %v395_v13 = vld [vmem:[#allocation5] sm:$0xff]   ;;  %v401_v15 = vld [vmem:[#allocation7 + $0x10] sm:$0xff]  }
  0x2a   :  { %v61_v14 = vld [vmem:[#allocation2] sm:$0xff]  ;;  %v402_v17 = vld [vmem:[#allocation7 + $0x8] sm:$0xff]   ;;  %v403_v18 = vld [vmem:[#allocation7] sm:$0xff]  }
  0x2b   :  { %v62_v16 = vpack.c.bf16 %v61_v14, %v61_v14  ;;  %v304_v19 = vld [vmem:[%s548_s2] ss:$0 sm:$0xff]  ;;  %s464_s2 = scalar_lea.vmem %s295_s12, 128 }
  0x2c   :  { %343 = vmatpush3.bf16.msra.mxu0 %v389_v2  ;;  %363 = vmatpush3.bf16.msra.mxu1 %v397_v6  ;;  %v313_v27 = vld [vmem:[%s550_s4] ss:$0 sm:$0xff]  ;;  %p465_p1 = scmp.ne.s32.totalorder %s295_s12, %s464_s2  ;;  %p470_p3 = scmp.lt.s32.totalorder %s464_s2, %s464_s2 }
  0x2d   :  { %344 = vmatprep.subr.bf16.mxu0 %v495_v0  ;;  %364 = vmatprep.subr.bf16.mxu1 %v495_v0 }
  0x2e   :  { %p471_p4 = por %p470_p3, %p469_p2 }
  0x30   :  { %345 = vmatpush3.bf16.msra.mxu0 %v390_v3  ;;  %365 = vmatpush3.bf16.msra.mxu1 %v398_v8  ;;  %p472_p5 = pnand %p471_p4, %p465_p1 }
  0x31   :  { %346 = vmatprep.subr.bf16.mxu0 %v495_v0  ;;  %366 = vmatprep.subr.bf16.mxu1 %v495_v0 }
  0x34   :  { %347 = vmatpush3.bf16.msra.mxu0 %v391_v5  ;;  %367 = vmatpush3.bf16.msra.mxu1 %v399_v10 }
  0x35   :  { %348 = vmatprep.subr.bf16.mxu0 %v495_v0  ;;  %368 = vmatprep.subr.bf16.mxu1 %v495_v0 }
  0x38   :  { %349 = vmatpush3.bf16.msra.mxu0 %v392_v7  ;;  %369 = vmatpush3.bf16.msra.mxu1 %v400_v12 }
  0x39   :  { %350 = vmatprep.subr.bf16.mxu0 %v495_v0  ;;  %370 = vmatprep.subr.bf16.mxu1 %v495_v0 }
  0x3c   :  { %351 = vmatpush3.bf16.msra.mxu0 %v393_v9  ;;  %371 = vmatpush3.bf16.msra.mxu1 %v401_v15 }
  0x3d   :  { %352 = vmatprep.subr.bf16.mxu0 %v495_v0  ;;  %372 = vmatprep.subr.bf16.mxu1 %v495_v0 }
  0x40   :  { %353 = vmatpush3.bf16.msra.mxu0 %v394_v11  ;;  %373 = vmatpush3.bf16.msra.mxu1 %v402_v17 }
  0x41   :  { %354 = vmatprep.subr.bf16.mxu0 %v495_v0  ;;  %374 = vmatprep.subr.bf16.mxu1 %v495_v0 }
  0x44   :  { %355 = vmatpush3.bf16.msra.mxu0 %v395_v13  ;;  %375 = vmatpush3.bf16.msra.mxu1 %v403_v18 }
  0x47   :  { %357 = vmatmul.mubr.bf16.vlgmr.msra.gmra.mxu0 %v62_v16 }
 0x107   :  { %v168_v20 = vpop.f32.mrf.mxu0 }
 0x108   :  { %v169_v21 = vadd.f32 %v304_v19, %v168_v20 }
 0x109   :  { %v358_v22 = vpop.f32.mrf.mxu0 }
 0x10a   :  { %v174_v23 = vmax.f32 %v169_v21, 0.0 }
 0x10b   :  { %v171_v24 = vpop.f32.mrf.mxu0 }
 0x10c   :  { %v175_v25 = vpack.c.bf16 %v174_v23, %v174_v23 }
 0x10d   :  { %v359_v26 = vpop.f32.mrf.mxu0 }
 0x10e   :  { %377 = vmatmul.mubr.bf16.vlgmr.msra.gmra.mxu1 %v175_v25 }
 0x1ce   :  { %v281_v28 = vpop.f32.mrf.mxu1 }
 0x1cf   :  { %v282_v29 = vadd.f32 %v313_v27, %v281_v28 }
 0x1d0   :  { %v378_v30 = vpop.f32.mrf.mxu1 }
 0x1d1   :  { %287 = vst [vmem:[#allocation8] sm:$0xff] %v282_v29 }
 0x1d2   :  { %v284_v31 = vpop.f32.mrf.mxu1 }
 0x1d3   :  { %475 = shalt.err (!%p472_p5)
}
 0x1d4   :  { %297 = dma.vmem_to_hbm [thread:$0]  %s295_s12, 128, %s551_s5, [#allocation4]   ;;  %v379_v32 = vpop.f32.mrf.mxu1 }
 0x1d5   :  { %488 = dma.done.wait [#allocation4], 128  }
 0x1d6   :  { %489 = vsyncadd [#allocation4], 4294967168 }
 0x1d7   :  { %301 = vsyncpa [#allocation3], 1 }
 0x1d8   :  { %302 = vsyncpa [#allocation6], 1 }
 0x1d9   :  { %303 = vsyncpa [#allocation4], 1 }

// kernel: tpu_custom_call.1
= control target key start
LH: loop header
LB: loop body
LE: loop exit
PB: predicated region body
PF: predicated region fallthrough
CT: control target
= control target key end

     0   :  { %10 = vsyncpa [#allocation3], 0  ;;  %s546_s0 = inlined_call_operand.hbm [shape: f32[8,128], index: 0, kind: input, shape index: {}]   ;;  %s547_s1 = inlined_call_operand.hbm [shape: bf16[128,128], index: 1, kind: input, shape index: {}]   ;;  %s548_s2 = inlined_call_operand.vmem [shape: f32[1,128], index: 2, kind: input, shape index: {}]   ;;  %s549_s3 = inlined_call_operand.hbm [shape: bf16[128,128], index: 3, kind: input, shape index: {}]   ;;  %s550_s4 = inlined_call_operand.vmem [shape: f32[1,128], index: 4, kind: input, shape index: {}]   ;;  %s551_s5 = inlined_call_operand.hbm [shape: f32[8,128], index: 5, kind: output, shape index: {}]  }
   0x1   :  { %11 = vsyncpa [#allocation6], 0 }
   0x2   :  { %12 = vsyncpa [#allocation4], 0  ;;  %s490_s18 = smov [#allocation5]  }
   0x3   :  { %s28_s19 = sshll.u32 %s490_s18, 4  ;;  %s29_s19 = int_to_ptr.vmem [resolvable:$true] %s28_s19 }
   0x4   :  { %s412_s20 = scalar_lea.vmem %s29_s19, 1024  ;;  %p417_p1 = scmp.lt.s32.totalorder %s29_s19, %s29_s19 }
   0x5   :  { %p413_p0 = scmp.ne.s32.totalorder %s29_s19, %s412_s20  ;;  %p418_p2 = scmp.lt.s32.totalorder %s412_s20, %s412_s20 }
   0x7   :  { %p419_p3 = por %p418_p2, %p417_p1 }
   0x9   :  { %p420_p4 = pnand %p419_p3, %p413_p0 }
   0xb   :  { %423 = shalt.err (!%p420_p4)
}
   0xc   :  { %s491_s21 = smov 64   ;;  %s492_s22 = smov 4  }
   0xd   :  { %34 = dma.hbm_to_vmem [thread:$0]  %s547_s1, 1024, %s29_s19, [#allocation6], %s491_s21, %s491_s21, %s492_s22  }
   0xe   :  { %s493_s25 = smov [#allocation2]   ;;  %s494_s27 = smov [#allocation7]  }
   0xf   :  { %s19_s26 = sshll.u32 %s493_s25, 4  ;;  %s42_s28 = sshll.u32 %s494_s27, 4  ;;  %s20_s26 = int_to_ptr.vmem [resolvable:$true] %s19_s26  ;;  %s43_s28 = int_to_ptr.vmem [resolvable:$true] %s42_s28 }
  0x10   :  { %s432_s29 = scalar_lea.vmem %s20_s26, 128  ;;  %p437_p6 = scmp.lt.s32.totalorder %s20_s26, %s20_s26 }
  0x11   :  { %p433_p5 = scmp.ne.s32.totalorder %s20_s26, %s432_s29  ;;  %p438_p7 = scmp.lt.s32.totalorder %s432_s29, %s432_s29 }
  0x13   :  { %p439_p8 = por %p438_p7, %p437_p6 }
  0x15   :  { %p440_p9 = pnand %p439_p8, %p433_p5 }
  0x17   :  { %443 = shalt.err (!%p440_p9)
}
  0x18   :  { %22 = dma.hbm_to_vmem [thread:$0]  %s546_s0, 128, %s20_s26, [#allocation3]  }
  0x19   :  { %s452_s7 = scalar_lea.vmem %s43_s28, 1024  ;;  %p457_p11 = scmp.lt.s32.totalorder %s43_s28, %s43_s28 }
  0x1a   :  { %p453_p10 = scmp.ne.s32.totalorder %s43_s28, %s452_s7  ;;  %p458_p12 = scmp.lt.s32.totalorder %s452_s7, %s452_s7 }
  0x1c   :  { %p459_p13 = por %p458_p12, %p457_p11 }
  0x1e   :  { %p460_p0 = pnand %p459_p13, %p453_p10 }
  0x20   :  { %463 = shalt.err (!%p460_p0)
}
  0x21   :  { %48 = dma.hbm_to_vmem [thread:$0]  %s549_s3, 1024, %s43_s28, [#allocation6], %s491_s21, %s491_s21, %s492_s22  }
  0x22   :  { %484 = dma.done.wait [#allocation3], 128  }
  0x23   :  { %485 = vsyncadd [#allocation3], 4294967168 }
  0x24   :  { %486 = dma.done.wait [#allocation6], 2048  }
  0x25   :  { %487 = vsyncadd [#allocation6], 4294965248  ;;  %v495_v0 = vmov 0.0   ;;  %vm496_vm0 = vmmov 0   ;;  %v388_v1 = vld [vmem:[#allocation5 + $0x38] sm:$0xff]   ;;  %v389_v2 = vld [vmem:[#allocation5 + $0x30] sm:$0xff]  }
  0x26   :  { %340 = vmatprep.subr.bf16.mxu0 %v495_v0  ;;  %356 = vmatprep.mubr.msk.bf16.mxu0 %vm496_vm0, %v495_v0  ;;  %v390_v3 = vld [vmem:[#allocation5 + $0x28] sm:$0xff]   ;;  %v396_v4 = vld [vmem:[#allocation7 + $0x38] sm:$0xff]   ;;  %v391_v5 = vld [vmem:[#allocation5 + $0x20] sm:$0xff]   ;;  %s497_s11 = smov [#allocation8]  }
  0x27   :  { %360 = vmatprep.subr.bf16.mxu1 %v495_v0  ;;  %376 = vmatprep.mubr.msk.bf16.mxu1 %vm496_vm0, %v495_v0  ;;  %v397_v6 = vld [vmem:[#allocation7 + $0x30] sm:$0xff]   ;;  %v392_v7 = vld [vmem:[#allocation5 + $0x18] sm:$0xff]   ;;  %v398_v8 = vld [vmem:[#allocation7 + $0x28] sm:$0xff]   ;;  %s294_s12 = sshll.u32 %s497_s11, 4  ;;  %s295_s12 = int_to_ptr.vmem [resolvable:$true] %s294_s12 }
  0x28   :  { %341 = vmatpush3.bf16.msra.mxu0 %v388_v1  ;;  %361 = vmatpush3.bf16.msra.mxu1 %v396_v4  ;;  %v393_v9 = vld [vmem:[#allocation5 + $0x10] sm:$0xff]   ;;  %v399_v10 = vld [vmem:[#allocation7 + $0x20] sm:$0xff]   ;;  %v394_v11 = vld [vmem:[#allocation5 + $0x8] sm:$0xff]   ;;  %p469_p2 = scmp.lt.s32.totalorder %s295_s12, %s295_s12 }
  0x29   :  { %342 = vmatprep.subr.bf16.mxu0 %v495_v0  ;;  %362 = vmatprep.subr.bf16.mxu1 %v495_v0  ;;  %v400_v12 = vld [vmem:[#allocation7 + $0x18] sm:$0xff]   ;;  %v395_v13 = vld [vmem:[#allocation5] sm:$0xff]   ;;  %v401_v15 = vld [vmem:[#allocation7 + $0x10] sm:$0xff]  }
  0x2a   :  { %v61_v14 = vld [vmem:[#allocation2] sm:$0xff]  ;;  %v402_v17 = vld [vmem:[#allocation7 + $0x8] sm:$0xff]   ;;  %v403_v18 = vld [vmem:[#allocation7] sm:$0xff]  }
  0x2b   :  { %v62_v16 = vpack.c.bf16 %v61_v14, %v61_v14  ;;  %v304_v19 = vld [vmem:[%s548_s2] ss:$0 sm:$0xff]  ;;  %s464_s2 = scalar_lea.vmem %s295_s12, 128 }
  0x2c   :  { %343 = vmatpush3.bf16.msra.mxu0 %v389_v2  ;;  %363 = vmatpush3.bf16.msra.mxu1 %v397_v6  ;;  %v313_v27 = vld [vmem:[%s550_s4] ss:$0 sm:$0xff]  ;;  %p465_p1 = scmp.ne.s32.totalorder %s295_s12, %s464_s2  ;;  %p470_p3 = scmp.lt.s32.totalorder %s464_s2, %s464_s2 }
  0x2d   :  { %344 = vmatprep.subr.bf16.mxu0 %v495_v0  ;;  %364 = vmatprep.subr.bf16.mxu1 %v495_v0 }
  0x2e   :  { %p471_p4 = por %p470_p3, %p469_p2 }
  0x30   :  { %345 = vmatpush3.bf16.msra.mxu0 %v390_v3  ;;  %365 = vmatpush3.bf16.msra.mxu1 %v398_v8  ;;  %p472_p5 = pnand %p471_p4, %p465_p1 }
  0x31   :  { %346 = vmatprep.subr.bf16.mxu0 %v495_v0  ;;  %366 = vmatprep.subr.bf16.mxu1 %v495_v0 }
  0x34   :  { %347 = vmatpush3.bf16.msra.mxu0 %v391_v5  ;;  %367 = vmatpush3.bf16.msra.mxu1 %v399_v10 }
  0x35   :  { %348 = vmatprep.subr.bf16.mxu0 %v495_v0  ;;  %368 = vmatprep.subr.bf16.mxu1 %v495_v0 }
  0x38   :  { %349 = vmatpush3.bf16.msra.mxu0 %v392_v7  ;;  %369 = vmatpush3.bf16.msra.mxu1 %v400_v12 }
  0x39   :  { %350 = vmatprep.subr.bf16.mxu0 %v495_v0  ;;  %370 = vmatprep.subr.bf16.mxu1 %v495_v0 }
  0x3c   :  { %351 = vmatpush3.bf16.msra.mxu0 %v393_v9  ;;  %371 = vmatpush3.bf16.msra.mxu1 %v401_v15 }
  0x3d   :  { %352 = vmatprep.subr.bf16.mxu0 %v495_v0  ;;  %372 = vmatprep.subr.bf16.mxu1 %v495_v0 }
  0x40   :  { %353 = vmatpush3.bf16.msra.mxu0 %v394_v11  ;;  %373 = vmatpush3.bf16.msra.mxu1 %v402_v17 }
  0x41   :  { %354 = vmatprep.subr.bf16.mxu0 %v495_v0  ;;  %374 = vmatprep.subr.bf16.mxu1 %v495_v0 }
  0x44   :  { %355 = vmatpush3.bf16.msra.mxu0 %v395_v13  ;;  %375 = vmatpush3.bf16.msra.mxu1 %v403_v18 }
  0x47   :  { %357 = vmatmul.mubr.bf16.vlgmr.msra.gmra.mxu0 %v62_v16 }
 0x107   :  { %v168_v20 = vpop.f32.mrf.mxu0 }
 0x108   :  { %v169_v21 = vadd.f32 %v304_v19, %v168_v20 }
 0x109   :  { %v358_v22 = vpop.f32.mrf.mxu0 }
 0x10a   :  { %v174_v23 = vmax.f32 %v169_v21, 0.0 }
 0x10b   :  { %v171_v24 = vpop.f32.mrf.mxu0 }
 0x10c   :  { %v175_v25 = vpack.c.bf16 %v174_v23, %v174_v23 }
 0x10d   :  { %v359_v26 = vpop.f32.mrf.mxu0 }
 0x10e   :  { %377 = vmatmul.mubr.bf16.vlgmr.msra.gmra.mxu1 %v175_v25 }
 0x1ce   :  { %v281_v28 = vpop.f32.mrf.mxu1 }
 0x1cf   :  { %v282_v29 = vadd.f32 %v313_v27, %v281_v28 }
 0x1d0   :  { %v378_v30 = vpop.f32.mrf.mxu1 }
 0x1d1   :  { %287 = vst [vmem:[#allocation8] sm:$0xff] %v282_v29 }
 0x1d2   :  { %v284_v31 = vpop.f32.mrf.mxu1 }
 0x1d3   :  { %475 = shalt.err (!%p472_p5)
}
 0x1d4   :  { %297 = dma.vmem_to_hbm [thread:$0]  %s295_s12, 128, %s551_s5, [#allocation4]   ;;  %v379_v32 = vpop.f32.mrf.mxu1 }
 0x1d5   :  { %488 = dma.done.wait [#allocation4], 128  }
 0x1d6   :  { %489 = vsyncadd [#allocation4], 4294967168 }
 0x1d7   :  { %301 = vsyncpa [#allocation3], 1 }
 0x1d8   :  { %302 = vsyncpa [#allocation6], 1 }
 0x1d9   :  { %303 = vsyncpa [#allocation4], 1 }

</bundles_post_ra>
